<compile_context>
chip_gen: v7x
topology: tpu7x:2x2x1
jax: 0.10.0
libtpu: 0.0.40
codegen_flags: <defaults>
</compile_context>

<pallas_src>
import jax
import jax.numpy as jnp
from jax.experimental import pallas as pl
from jax.experimental.pallas import tpu as pltpu


def _critic_kernel(state_ref,
                   w_in_ref, b_in_ref,
                   w_fold_ref, b_fold_ref,
                   w2_ref, b2_ref,
                   out_ref):
    mxu_dtype = w_in_ref.dtype  # bf16 (default) or f32

    # h = relu(state @ W_in + b_in)                          (TB, 256)
    s = state_ref[...].astype(mxu_dtype)
    h = jnp.dot(s, w_in_ref[...], preferred_element_type=jnp.float32) + b_in_ref[...]
    h = jnp.maximum(h, 0.0)

    # f1 = relu(h @ W_fold + b_fold)                         (TB, 128)
    # W_fold = (I + Wv@Wo) @ W1 folds the seq-len-1 attention, the residual
    # add and fc1 into a single MXU matmul (precomputed in the wrapper).
    f1 = jnp.dot(h.astype(mxu_dtype), w_fold_ref[...],
                 preferred_element_type=jnp.float32) + b_fold_ref[...]
    f1 = jnp.maximum(f1, 0.0)

    # out = f1 @ W2 + b2 with N == 1: keep it off the MXU.  VPU multiply +
    # XLU lane reduction is essentially free next to the two matmuls above.
    out_ref[...] = jnp.sum(f1 * w2_ref[...], axis=-1, keepdims=True) + b2_ref[...]


def fold_params(params, mxu_dtype=jnp.bfloat16):
    """Collapse the seq-len-1 attention + residual + fc1 into one matmul.

    Folding matmuls run at Precision.HIGHEST so no reduced-precision rounding
    is baked into W_fold/b_fold; only the final cast to `mxu_dtype` (for the
    MXU operands) reduces precision, and the biases stay f32.
    """
    hp = jax.lax.Precision.HIGHEST
    E = params["wv"].shape[0]
    eye = jnp.eye(E, dtype=jnp.float32)
    w_res = eye + jnp.dot(params["wv"], params["wo"], precision=hp)       # (256, 256)
    b_res = jnp.dot(params["bv"], params["wo"], precision=hp) + params["bo"]  # (1, 256)
    return {
        "w_in": params["w_in"].astype(mxu_dtype),                          # (D, 256)
        "b_in": params["b_in"],                                            # (1, 256)
        "w_fold": jnp.dot(w_res, params["w1"], precision=hp).astype(mxu_dtype),  # (256, 128)
        "b_fold": jnp.dot(b_res, params["w1"], precision=hp) + params["b1"],     # (1, 128)
        "w2_row": params["w2"].T,                                          # (1, 128)
        "b2": params["b2"],                                                # (1, 1)
    }


def _round_up(x, m):
    return -(-x // m) * m


def critic_forward(state, params, *, tb=None, mxu_dtype=jnp.bfloat16):
    """state: (B, input_dim) float32 -> (B, 1) float32."""
    B, D = state.shape
    folded = fold_params(params, mxu_dtype=mxu_dtype)

    # Batch tile selection (see header).  One step for small/medium B (step
    # overhead dominates); for large B an even number of steps >= 2 so v7x's
    # two TensorCores both get work, with the per-step tile capped ~4096 rows
    # (~10 MiB live VMEM, under the v5e 16 MiB scoped default).
    if tb is None:
        if B <= 1024:
            tb = _round_up(max(B, 1), 8)
        else:
            n_steps = _round_up(max(2, pl.cdiv(B, 4096)), 2)
            tb = _round_up(pl.cdiv(B, n_steps), 8)
    grid = pl.cdiv(B, tb)

    weight_args = [
        folded["w_in"], folded["b_in"],
        folded["w_fold"], folded["b_fold"],
        folded["w2_row"], folded["b2"],
    ]

    def full_spec(arr):
        # Whole (small) parameter array resident in VMEM; constant block index
        # means it is DMA'd once and reused across all batch tiles.
        return pl.BlockSpec(arr.shape, lambda i: (0, 0))

    # No jnp.pad: grid = cdiv(B, tb); the last block may be ragged.  The
    # computation is strictly row-independent, so garbage rows read OOB in the
    # last input block only feed output rows that are dropped on store.
    in_specs = [pl.BlockSpec((tb, D), lambda i: (i, 0))] + [full_spec(w) for w in weight_args]
    out_specs = pl.BlockSpec((tb, 1), lambda i: (i, 0))

    E, F = folded["w_fold"].shape  # 256, 128
    weight_bytes = sum(int(w.size) * w.dtype.itemsize for w in weight_args)
    cost = pl.CostEstimate(
        flops=2 * B * (D * E + E * F + F),
        transcendentals=0,
        bytes_accessed=B * D * 4 + B * 4 + weight_bytes,
    )

    return pl.pallas_call(
        _critic_kernel,
        out_shape=jax.ShapeDtypeStruct((B, 1), jnp.float32),
        grid=(grid,),
        in_specs=in_specs,
        out_specs=out_specs,
        compiler_params=pltpu.CompilerParams(
            dimension_semantics=("parallel",),
        ),
        cost_estimate=cost,
    )(state, *weight_args)


def init_params(key, input_dim):
    """Deterministic synthetic parameters matching Critic.__init__ shapes.

    Weights stored transposed (in, out); biases as (1, out).
    """
    ks = jax.random.split(key, 14)

    def w(k, shape):
        return 0.1 * jax.random.normal(k, shape, dtype=jnp.float32)

    return {
        # input_layer: Linear(input_dim, 256)
        "w_in": w(ks[0], (input_dim, 256)), "b_in": w(ks[1], (1, 256)),
        # attention.values: Linear(256, 256)
        "wv": w(ks[2], (256, 256)), "bv": w(ks[3], (1, 256)),
        # attention.keys / queries exist in the module but are dead for seq_len=1
        "wk": w(ks[4], (256, 256)), "bk": w(ks[5], (1, 256)),
        "wq": w(ks[6], (256, 256)), "bq": w(ks[7], (1, 256)),
        # attention.fc_out: Linear(256, 256)
        "wo": w(ks[8], (256, 256)), "bo": w(ks[9], (1, 256)),
        # fc1: Linear(256, 128)
        "w1": w(ks[10], (256, 128)), "b1": w(ks[11], (1, 128)),
        # fc2: Linear(128, 1)
        "w2": w(ks[12], (128, 1)), "b2": w(ks[13], (1, 1)),
    }


def critic_reference(state, params):
    """Pure-JAX reference replicating the PyTorch graph (including the full
    multi-head attention with softmax), for numerical verification."""
    h = jax.nn.relu(state @ params["w_in"] + params["b_in"])          # (B, 256)
    x = h[:, None, :]                                                 # (B, 1, 256)
    B, S, E = x.shape
    heads, dh = 4, E // 4
    v = (x @ params["wv"] + params["bv"]).reshape(B, S, heads, dh)
    k = (x @ params["wk"] + params["bk"]).reshape(B, S, heads, dh)
    q = (x @ params["wq"] + params["bq"]).reshape(B, S, heads, dh)
    energy = jnp.einsum("bqhd,bkhd->bhqk", q, k)
    attn = jax.nn.softmax(energy / jnp.sqrt(float(E)), axis=3)
    out = jnp.einsum("bhqk,bkhd->bqhd", attn, v).reshape(B, S, E)
    a = out @ params["wo"] + params["bo"]                             # (B, 1, 256)
    xr = h + a[:, 0, :]
    f1 = jax.nn.relu(xr @ params["w1"] + params["b1"])
    return f1 @ params["w2"] + params["b2"]                           # (B, 1)


if __name__ == "__main__":
    key = jax.random.PRNGKey(0)
    k_param, k_state = jax.random.split(key)

    B, input_dim = 8, 32
    params = init_params(k_param, input_dim)
    state = jax.random.normal(k_state, (B, input_dim), dtype=jnp.float32)
    ref = critic_reference(state, params)

    # f32 MXU path: exact structural check against the full-softmax reference.
    out_f32 = jax.block_until_ready(
        critic_forward(state, params, mxu_dtype=jnp.float32))
    assert out_f32.shape == (B, 1)
    assert jnp.allclose(out_f32, ref, atol=1e-4, rtol=1e-4), "f32 path mismatch (B=8)"

    # bf16 MXU path (default fast path): tolerance loosened on purpose to
    # cover bf16 input rounding of the two matmuls (~1e-2 absolute here).
    out_bf16 = jax.block_until_ready(critic_forward(state, params))
    assert out_bf16.shape == (B, 1)
    assert jnp.allclose(out_bf16, ref, atol=3e-2, rtol=3e-2), "bf16 path mismatch (B=8)"

    # Multi-step grid with a ragged last block (B=20, tb=16 -> 2 steps, last
    # block has 4 valid + 12 dropped rows); no jnp.pad anywhere.
    B2 = 20
    state2 = jax.random.normal(jax.random.PRNGKey(1), (B2, input_dim), dtype=jnp.float32)
    ref2 = critic_reference(state2, params)
    out2_f32 = jax.block_until_ready(
        critic_forward(state2, params, tb=16, mxu_dtype=jnp.float32))
    assert out2_f32.shape == (B2, 1)
    assert jnp.allclose(out2_f32, ref2, atol=1e-4, rtol=1e-4), "f32 ragged-grid mismatch (B=20)"
    out2_bf16 = jax.block_until_ready(critic_forward(state2, params, tb=16))
    assert out2_bf16.shape == (B2, 1)
    assert jnp.allclose(out2_bf16, ref2, atol=3e-2, rtol=3e-2), "bf16 ragged-grid mismatch (B=20)"

    print("KERNEL_OK")
</pallas_src>

<mosaic_0001>
module attributes {stable_mosaic.version = 11 : i64} {
  func.func @_critic_kernel(%arg0: i32, %arg1: memref<8x32xf32, #tpu.memory_space<vmem>>, %arg2: memref<32x256xf32, #tpu.memory_space<vmem>>, %arg3: memref<1x256xf32, #tpu.memory_space<vmem>>, %arg4: memref<256x128xf32, #tpu.memory_space<vmem>>, %arg5: memref<1x128xf32, #tpu.memory_space<vmem>>, %arg6: memref<1x128xf32, #tpu.memory_space<vmem>>, %arg7: memref<1x1xf32, #tpu.memory_space<vmem>>, %arg8: memref<8x1xf32, #tpu.memory_space<vmem>>) attributes {dimension_semantics = [#tpu.dimension_semantics<parallel>], iteration_bounds = array<i64: 1>, scalar_prefetch = 0 : i64, scratch_operands = 0 : i64, tpu.core_type = #tpu.core_type<tc>, window_params = [{transform_indices = @transform_0, window_bounds = array<i64: 8, 32>}, {pipeline_mode = #tpu.pipeline_mode<synchronous>, transform_indices = @transform_1, window_bounds = array<i64: 32, 256>}, {pipeline_mode = #tpu.pipeline_mode<synchronous>, transform_indices = @transform_2, window_bounds = array<i64: 1, 256>}, {pipeline_mode = #tpu.pipeline_mode<synchronous>, transform_indices = @transform_3, window_bounds = array<i64: 256, 128>}, {pipeline_mode = #tpu.pipeline_mode<synchronous>, transform_indices = @transform_4, window_bounds = array<i64: 1, 128>}, {pipeline_mode = #tpu.pipeline_mode<synchronous>, transform_indices = @transform_5, window_bounds = array<i64: 1, 128>}, {pipeline_mode = #tpu.pipeline_mode<synchronous>, transform_indices = @transform_6, window_bounds = array<i64: 1, 1>}, {transform_indices = @transform_7, window_bounds = array<i64: 8, 1>}]} {
    %c0 = arith.constant 0 : index
    %c0_0 = arith.constant 0 : index
    %0 = vector.load %arg1[%c0, %c0_0] : memref<8x32xf32, #tpu.memory_space<vmem>>, vector<8x32xf32>
    %c0_1 = arith.constant 0 : index
    %c0_2 = arith.constant 0 : index
    %1 = vector.load %arg2[%c0_1, %c0_2] : memref<32x256xf32, #tpu.memory_space<vmem>>, vector<32x256xf32>
    %cst = arith.constant dense<0.000000e+00> : vector<8x256xf32>
    %2 = tpu.matmul %0, %1, %cst {dimension_numbers = #tpu.dot_dimension_numbers<[1], [0], [0], [1], [0, 0, 1, 1], [], []>} : vector<8x32xf32>, vector<32x256xf32>, vector<8x256xf32> -> vector<8x256xf32>
    %c0_3 = arith.constant 0 : index
    %c0_4 = arith.constant 0 : index
    %3 = vector.load %arg3[%c0_3, %c0_4] : memref<1x256xf32, #tpu.memory_space<vmem>>, vector<1x256xf32>
    %4 = vector.broadcast %3 : vector<1x256xf32> to vector<8x256xf32>
    %5 = arith.addf %2, %4 : vector<8x256xf32>
    %cst_5 = arith.constant 0.000000e+00 : f32
    %6 = vector.broadcast %cst_5 : f32 to vector<8x256xf32>
    %7 = arith.maximumf %5, %6 : vector<8x256xf32>
    %c0_6 = arith.constant 0 : index
    %c0_7 = arith.constant 0 : index
    %8 = vector.load %arg4[%c0_6, %c0_7] : memref<256x128xf32, #tpu.memory_space<vmem>>, vector<256x128xf32>
    %cst_8 = arith.constant dense<0.000000e+00> : vector<8x128xf32>
    %9 = tpu.matmul %7, %8, %cst_8 {dimension_numbers = #tpu.dot_dimension_numbers<[1], [0], [0], [1], [0, 0, 1, 1], [], []>} : vector<8x256xf32>, vector<256x128xf32>, vector<8x128xf32> -> vector<8x128xf32>
    %c0_9 = arith.constant 0 : index
    %c0_10 = arith.constant 0 : index
    %10 = vector.load %arg5[%c0_9, %c0_10] : memref<1x128xf32, #tpu.memory_space<vmem>>, vector<1x128xf32>
    %11 = vector.broadcast %10 : vector<1x128xf32> to vector<8x128xf32>
    %12 = arith.addf %9, %11 : vector<8x128xf32>
    %cst_11 = arith.constant 0.000000e+00 : f32
    %13 = vector.broadcast %cst_11 : f32 to vector<8x128xf32>
    %14 = arith.maximumf %12, %13 : vector<8x128xf32>
    %c0_12 = arith.constant 0 : index
    %c0_13 = arith.constant 0 : index
    %15 = vector.load %arg6[%c0_12, %c0_13] : memref<1x128xf32, #tpu.memory_space<vmem>>, vector<1x128xf32>
    %16 = vector.broadcast %15 : vector<1x128xf32> to vector<8x128xf32>
    %17 = arith.mulf %14, %16 : vector<8x128xf32>
    %cst_14 = arith.constant dense<0.000000e+00> : vector<8xf32>
    %18 = vector.multi_reduction <add>, %17, %cst_14 [1] : vector<8x128xf32> to vector<8xf32>
    %19 = vector.shape_cast %18 : vector<8xf32> to vector<8x1xf32>
    %c0_15 = arith.constant 0 : index
    %c0_16 = arith.constant 0 : index
    %20 = vector.load %arg7[%c0_15, %c0_16] : memref<1x1xf32, #tpu.memory_space<vmem>>, vector<1x1xf32>
    %21 = vector.broadcast %20 : vector<1x1xf32> to vector<8x1xf32>
    %22 = arith.addf %19, %21 : vector<8x1xf32>
    %c0_17 = arith.constant 0 : index
    %c0_18 = arith.constant 0 : index
    %23 = vector.load %arg8[%c0_17, %c0_18] : memref<8x1xf32, #tpu.memory_space<vmem>>, vector<8x1xf32>
    tpu.vector_store %arg8[%c0_17, %c0_18], %22 {strides = array<i32>} : memref<8x1xf32, #tpu.memory_space<vmem>>, vector<8x1xf32>,
    return
  }
  func.func @transform_0(%arg0: i32) -> (i32, i32) {
    %c0_i32 = arith.constant 0 : i32
    %c0_i32_0 = arith.constant 0 : i32
    return %arg0, %c0_i32 : i32, i32
  }
  func.func @transform_1(%arg0: i32) -> (i32, i32) {
    %c0_i32 = arith.constant 0 : i32
    %c0_i32_0 = arith.constant 0 : i32
    %c0_i32_1 = arith.constant 0 : i32
    return %c0_i32, %c0_i32_0 : i32, i32
  }
  func.func @transform_2(%arg0: i32) -> (i32, i32) {
    %c0_i32 = arith.constant 0 : i32
    %c0_i32_0 = arith.constant 0 : i32
    %c0_i32_1 = arith.constant 0 : i32
    return %c0_i32, %c0_i32_0 : i32, i32
  }
  func.func @transform_3(%arg0: i32) -> (i32, i32) {
    %c0_i32 = arith.constant 0 : i32
    %c0_i32_0 = arith.constant 0 : i32
    %c0_i32_1 = arith.constant 0 : i32
    return %c0_i32, %c0_i32_0 : i32, i32
  }
  func.func @transform_4(%arg0: i32) -> (i32, i32) {
    %c0_i32 = arith.constant 0 : i32
    %c0_i32_0 = arith.constant 0 : i32
    %c0_i32_1 = arith.constant 0 : i32
    return %c0_i32, %c0_i32_0 : i32, i32
  }
  func.func @transform_5(%arg0: i32) -> (i32, i32) {
    %c0_i32 = arith.constant 0 : i32
    %c0_i32_0 = arith.constant 0 : i32
    %c0_i32_1 = arith.constant 0 : i32
    return %c0_i32, %c0_i32_0 : i32, i32
  }
  func.func @transform_6(%arg0: i32) -> (i32, i32) {
    %c0_i32 = arith.constant 0 : i32
    %c0_i32_0 = arith.constant 0 : i32
    %c0_i32_1 = arith.constant 0 : i32
    return %c0_i32, %c0_i32_0 : i32, i32
  }
  func.func @transform_7(%arg0: i32) -> (i32, i32) {
    %c0_i32 = arith.constant 0 : i32
    %c0_i32_0 = arith.constant 0 : i32
    return %arg0, %c0_i32 : i32, i32
  }
}

</mosaic_0001>

<bundles_post_ra>
// kernel: tpu_custom_call.1
= control target key start
LH: loop header
LB: loop body
LE: loop exit
PB: predicated region body
PF: predicated region fallthrough
CT: control target
= control target key end

     0   :  { %s557_s0 = inlined_call_operand.hbm [shape: f32[8,32], index: 0, kind: input, shape index: {}]   ;;  %s558_s1 = inlined_call_operand.hbm [shape: f32[32,256], index: 1, kind: input, shape index: {}]   ;;  %s559_s2 = inlined_call_operand.vmem [shape: f32[1,256], index: 2, kind: input, shape index: {}]   ;;  %s560_s3 = inlined_call_operand.hbm [shape: f32[256,128], index: 3, kind: input, shape index: {}]   ;;  %s561_s4 = inlined_call_operand.vmem [shape: f32[1,128], index: 4, kind: input, shape index: {}]   ;;  %s562_s5 = inlined_call_operand.vmem [shape: f32[1,128], index: 5, kind: input, shape index: {}]   ;;  %s563_s6 = inlined_call_operand.<no memory space> [shape: f32[1,1], index: 6, kind: input, shape index: {}]   ;;  %s564_s7 = inlined_call_operand.vmem [shape: f32[8,1], index: 7, kind: output, shape index: {}]  }
   0x1   :  { %v12_v0 = vstv %s563_s6 }
   0x2   :  { %13 = vst [vmem:[#allocation2] sm:$0x1] %v12_v0 }
   0x3   :  { %14 = vsyncpa [#allocation4], 0 }
   0x4   :  { %15 = vsyncpa [#allocation6], 0  ;;  %s458_s26 = smov [#allocation5]   ;;  %s388_s30 = scalar_lea.hbm %s558_s1, 1024 }
   0x5   :  { %s31_s27 = sshll.u32 %s458_s26, 4  ;;  %p389_p0 = scmp.ne.s32.totalorder %s558_s1, %s388_s30  ;;  %s32_s27 = int_to_ptr.vmem [resolvable:$true] %s31_s27 }
   0x6   :  { %p392_p1 = scmp.lt.u32.totalorder %s388_s30, %s558_s1 }
   0x8   :  { %p394_p2 = pnand %p392_p1, %p389_p0 }
   0xa   :  { %397 = shalt.err (!%p394_p2)
}
   0xb   :  { %s398_s6 = scalar_lea.vmem %s32_s27, 1024  ;;  %p403_p4 = scmp.lt.s32.totalorder %s32_s27, %s32_s27 }
   0xc   :  { %p399_p3 = scmp.ne.s32.totalorder %s32_s27, %s398_s6  ;;  %p404_p5 = scmp.lt.s32.totalorder %s398_s6, %s398_s6 }
   0xe   :  { %p405_p6 = por %p404_p5, %p403_p4 }
  0x10   :  { %p406_p7 = pnand %p405_p6, %p399_p3 }
  0x12   :  { %409 = shalt.err (!%p406_p7)
}
  0x13   :  { %s459_s12 = smov 256   ;;  %s460_s13 = smov 16  }
  0x14   :  { %37 = dma.hbm_to_vmem [thread:$0]  %s558_s1, 1024, %s32_s27, [#allocation6], %s459_s12, %s459_s12, %s460_s13  }
  0x15   :  { %s461_s16 = smov [#allocation3]   ;;  %s462_s18 = smov [#allocation7]  }
  0x16   :  { %s22_s17 = sshll.u32 %s461_s16, 4  ;;  %s45_s19 = sshll.u32 %s462_s18, 4  ;;  %s23_s17 = int_to_ptr.vmem [resolvable:$true] %s22_s17  ;;  %s46_s19 = int_to_ptr.vmem [resolvable:$true] %s45_s19 }
  0x17   :  { %s410_s22 = scalar_lea.hbm %s557_s0, 128 }
  0x18   :  { %p411_p8 = scmp.ne.s32.totalorder %s557_s0, %s410_s22  ;;  %p414_p9 = scmp.lt.u32.totalorder %s410_s22, %s557_s0 }
  0x1a   :  { %p416_p10 = pnand %p414_p9, %p411_p8 }
  0x1c   :  { %419 = shalt.err (!%p416_p10)
}
  0x1d   :  { %s420_s1 = scalar_lea.vmem %s23_s17, 128  ;;  %p425_p12 = scmp.lt.s32.totalorder %s23_s17, %s23_s17 }
  0x1e   :  { %p421_p11 = scmp.ne.s32.totalorder %s23_s17, %s420_s1  ;;  %p426_p13 = scmp.lt.s32.totalorder %s420_s1, %s420_s1 }
  0x20   :  { %p427_p0 = por %p426_p13, %p425_p12 }
  0x22   :  { %p428_p1 = pnand %p427_p0, %p421_p11 }
  0x24   :  { %431 = shalt.err (!%p428_p1)
}
  0x25   :  { %25 = dma.hbm_to_vmem [thread:$0]  %s557_s0, 128, %s23_s17, [#allocation4]  }
  0x26   :  { %s432_s8 = scalar_lea.hbm %s560_s3, 4096 }
  0x27   :  { %p433_p2 = scmp.ne.s32.totalorder %s560_s3, %s432_s8  ;;  %p436_p3 = scmp.lt.u32.totalorder %s432_s8, %s560_s3 }
  0x29   :  { %p438_p4 = pnand %p436_p3, %p433_p2 }
  0x2b   :  { %441 = shalt.err (!%p438_p4)
}
  0x2c   :  { %s442_s12 = scalar_lea.vmem %s46_s19, 4096  ;;  %p447_p6 = scmp.lt.s32.totalorder %s46_s19, %s46_s19 }
  0x2d   :  { %p443_p5 = scmp.ne.s32.totalorder %s46_s19, %s442_s12  ;;  %p448_p7 = scmp.lt.s32.totalorder %s442_s12, %s442_s12 }
  0x2f   :  { %p449_p8 = por %p448_p7, %p447_p6 }
  0x31   :  { %p450_p9 = pnand %p449_p8, %p443_p5 }
  0x33   :  { %453 = shalt.err (!%p450_p9)
}
  0x34   :  { %s463_s0 = smov 128   ;;  %s464_s13 = smov 8  }
  0x35   :  { %51 = dma.hbm_to_vmem [thread:$0]  %s560_s3, 4096, %s46_s19, [#allocation6], %s463_s0, %s463_s0, %s464_s13  }
  0x36   :  { %454 = dma.done.wait [#allocation4], 128  }
  0x37   :  { %455 = vsyncadd [#allocation4], 4294967168 }
  0x38   :  { %456 = dma.done.wait [#allocation6], 5120  }
  0x39   :  { %457 = vsyncadd [#allocation6], 4294962176  ;;  %v465_v1 = vmov 0.0   ;;  %v69_v2 = vld [vmem:[#allocation5 + $0x8] sm:$0xff]  ;;  %v71_v3 = vld [vmem:[#allocation5 + $0x18] sm:$0xff]  ;;  %vm88_vm0 = vcmask 261120   ;;  %v78_v63 = vlaneseq }
  0x3a   :  { %156 = vmatprep.mubr.f32.mxu0 %v465_v1  ;;  %v68_v4 = vld [vmem:[#allocation5] sm:$0xff]  ;;  %v340_v5 = vpack.c.bf16 %v71_v3, %v69_v2  ;;  %v70_v6 = vld [vmem:[#allocation5 + $0x10] sm:$0xff]  ;;  %v73_v7 = vld [vmem:[#allocation5 + $0x28] sm:$0xff]  ;;  %vm293_vm1 = vcmask 7168  }
  0x3b   :  { %v75_v8 = vld [vmem:[#allocation5 + $0x38] sm:$0xff]  ;;  %v342_v9 = vpack.c.bf16 %v70_v6, %v68_v4  ;;  %v72_v11 = vld [vmem:[#allocation5 + $0x20] sm:$0xff]  ;;  %v74_v12 = vld [vmem:[#allocation5 + $0x30] sm:$0xff]  ;;  %v79_v0 = vshrl.u32 %v78_v63, 7 }
  0x3c   :  { %v344_v10 = vpack.c.bf16 %v75_v8, %v73_v7  ;;  %341 = vmatprep.subr.bf16.mxu0 %v340_v5  ;;  %v181_v13 = vld [vmem:[#allocation7 + $0x80] sm:$0xff]  ;;  %v182_v14 = vld [vmem:[#allocation7 + $0x88] sm:$0xff]  ;;  %v346_v16 = vpack.c.bf16 %v74_v12, %v72_v11  ;;  %v183_v19 = vld [vmem:[#allocation7 + $0x90] sm:$0xff] }
  0x3d   :  { %v165_v15 = vld [vmem:[#allocation7] sm:$0xff]  ;;  %343 = vmatpush1.bf16.msra.mxu0 %v342_v9  ;;  %v348_v17 = vpack.c.bf16 %v182_v14, %v181_v13  ;;  %v166_v18 = vld [vmem:[#allocation7 + $0x8] sm:$0xff]  ;;  %v184_v20 = vld [vmem:[#allocation7 + $0x98] sm:$0xff]  ;;  %v80_v1 = vsub.s32 0, %v79_v0  ;;  %v84_v3 = vsub.s32 1, %v79_v0 }
  0x3e   :  { %345 = vmatprep.subr.bf16.mxu0 %v344_v10  ;;  %v350_v21 = vpack.c.bf16 %v166_v18, %v165_v15  ;;  %v352_v22 = vpack.c.bf16 %v184_v20, %v183_v19  ;;  %v167_v23 = vld [vmem:[#allocation7 + $0x10] sm:$0xff]  ;;  %v168_v24 = vld [vmem:[#allocation7 + $0x18] sm:$0xff]  ;;  %v185_v25 = vld [vmem:[#allocation7 + $0xa0] sm:$0xff] }
  0x3f   :  { %349 = vmatprep.subr.bf16.mxu1 %v348_v17  ;;  %v186_v26 = vld [vmem:[#allocation7 + $0xa8] sm:$0xff]  ;;  %v354_v27 = vpack.c.bf16 %v168_v24, %v167_v23  ;;  %v67_v28 = vld [vmem:[#allocation3] sm:$0xff]  ;;  %v169_v30 = vld [vmem:[#allocation7 + $0x20] sm:$0xff] }
  0x40   :  { %351 = vmatpush3.bf16.msra.mxu1 %v350_v21  ;;  %v356_v29 = vpack.c.bf16 %v186_v26, %v185_v25  ;;  %v170_v31 = vld [vmem:[#allocation7 + $0x28] sm:$0xff]  ;;  %v187_v32 = vld [vmem:[#allocation7 + $0xb0] sm:$0xff]  ;;  %v188_v33 = vld [vmem:[#allocation7 + $0xb8] sm:$0xff] }
  0x41   :  { %347 = vmatpush1.bf16.msra.mxu0 %v346_v16  ;;  %353 = vmatprep.subr.bf16.mxu1 %v352_v22  ;;  %v358_v34 = vpack.c.bf16 %v170_v31, %v169_v30  ;;  %v360_v35 = vpack.c.bf16 %v188_v33, %v187_v32  ;;  %v171_v36 = vld [vmem:[#allocation7 + $0x30] sm:$0xff]  ;;  %v172_v37 = vld [vmem:[#allocation7 + $0x38] sm:$0xff]  ;;  %v189_v38 = vld [vmem:[#allocation7 + $0xc0] sm:$0xff] }
  0x42   :  { %v190_v39 = vld [vmem:[#allocation7 + $0xc8] sm:$0xff]  ;;  %v362_v40 = vpack.c.bf16 %v172_v37, %v171_v36  ;;  %v173_v42 = vld [vmem:[#allocation7 + $0x40] sm:$0xff]  ;;  %v191_v44 = vld [vmem:[#allocation7 + $0xd0] sm:$0xff] }
  0x43   :  { %v364_v41 = vpack.c.bf16 %v190_v39, %v189_v38  ;;  %v174_v43 = vld [vmem:[#allocation7 + $0x48] sm:$0xff]  ;;  %v192_v45 = vld [vmem:[#allocation7 + $0xd8] sm:$0xff]  ;;  %v175_v48 = vld [vmem:[#allocation7 + $0x50] sm:$0xff] }
  0x44   :  { %301 = vmatmul.mubr.msk.f32.vlgmr.msra.gmra.mrb[0].mxu0 %vm88_vm0, %v67_v28  ;;  %355 = vmatpush3.bf16.msra.mxu1 %v354_v27  ;;  %v366_v46 = vpack.c.bf16 %v174_v43, %v173_v42  ;;  %v368_v47 = vpack.c.bf16 %v192_v45, %v191_v44  ;;  %v176_v49 = vld [vmem:[#allocation7 + $0x58] sm:$0xff]  ;;  %v193_v50 = vld [vmem:[#allocation7 + $0xe0] sm:$0xff]  ;;  %v194_v51 = vld [vmem:[#allocation7 + $0xe8] sm:$0xff] }
  0x45   :  { %357 = vmatprep.subr.bf16.mxu1 %v356_v29  ;;  %v370_v52 = vpack.c.bf16 %v176_v49, %v175_v48  ;;  %v372_v53 = vpack.c.bf16 %v194_v51, %v193_v50  ;;  %v177_v54 = vld [vmem:[#allocation7 + $0x60] sm:$0xff]  ;;  %v178_v55 = vld [vmem:[#allocation7 + $0x68] sm:$0xff]  ;;  %v195_v57 = vld [vmem:[#allocation7 + $0xf0] sm:$0xff] }
  0x46   :  { %v374_v56 = vpack.c.bf16 %v178_v55, %v177_v54  ;;  %v196_v58 = vld [vmem:[#allocation7 + $0xf8] sm:$0xff]  ;;  %v179_v60 = vld [vmem:[#allocation7 + $0x70] sm:$0xff] }
  0x47   :  { %v376_v59 = vpack.c.bf16 %v196_v58, %v195_v57  ;;  %v180_v61 = vld [vmem:[#allocation7 + $0x78] sm:$0xff]  ;;  %v302_v14 = vld [vmem:[%s561_s4] ss:$0 sm:$0xff] }
  0x48   :  { %359 = vmatpush3.bf16.msra.mxu1 %v358_v34  ;;  %v378_v62 = vpack.c.bf16 %v180_v61, %v179_v60  ;;  %v76_v2 = vld [vmem:[%s559_s2] sm:$0x3] }
  0x49   :  { %361 = vmatprep.subr.bf16.mxu1 %v360_v35  ;;  %v81_v4 = vrot.slane %v76_v2, %v80_v1  ;;  %v85_v5 = vrot.slane %v76_v2, %v84_v3  ;;  %v303_v17 = vld [vmem:[%s562_s5] ss:$0 sm:$0xff] }
  0x4a   :  { %v304_v20 = vld [vmem:[#allocation2] ss:$0 sm:$0xff] }
  0x4c   :  { %363 = vmatpush3.bf16.msra.mxu1 %v362_v40 }
  0x4d   :  { %365 = vmatprep.subr.bf16.mxu1 %v364_v41 }
  0x50   :  { %367 = vmatpush3.bf16.msra.mxu1 %v366_v46 }
  0x51   :  { %369 = vmatprep.subr.bf16.mxu1 %v368_v47 }
  0x54   :  { %371 = vmatpush3.bf16.msra.mxu1 %v370_v52 }
  0x55   :  { %373 = vmatprep.subr.bf16.mxu1 %v372_v53 }
  0x58   :  { %375 = vmatpush3.bf16.msra.mxu1 %v374_v56 }
  0x59   :  { %377 = vmatprep.subr.bf16.mxu1 %v376_v59 }
  0x5c   :  { %379 = vmatpush3.bf16.msra.mxu1 %v378_v62 }
 0x117   :  { %v158_v6 = vpop.f32.mrb[0].mxu0 }
 0x118   :  { %v159_v7 = vadd.f32 %v158_v6, %v81_v4  ;;  %v160_v8 = vpop.f32.mrb[1].mxu0 }
 0x119   :  { %v161_v9 = vadd.f32 %v160_v8, %v85_v5 }
 0x11a   :  { %v163_v11 = vmax.f32 %v159_v7, 0.0 }
 0x11b   :  { %v164_v10 = vmax.f32 %v161_v9, 0.0 }
 0x11d   :  { %268 = vmatprep.mubr.f32.mxu1 %v164_v10 }
 0x11e   :  { %269 = vmatmul.mubr.f32.vlgmr.msra.gmra.mrb[0].mxu1 %v163_v11 }
 0x1f1   :  { %v337_v12 = vpop.f32.mrb[0].mxu1 }
 0x1f2   :  { %v338_v13 = vpop.f32.mrb[1].mxu1 }
 0x1f3   :  { %v339_v15 = vadd.f32 %v338_v13, %v337_v12 }
 0x1f5   :  { %v271_v16 = vadd.f32 %v339_v15, %v302_v14 }
 0x1f7   :  { %v274_v18 = vmax.f32 %v271_v16, 0.0 }
 0x1f9   :  { %v282_v19 = vmul.f32 %v303_v17, %v274_v18 }
 0x1fb   :  { %283 = vadd.xlane.f32.xlu0 %v282_v19 }
 0x288   :  { %v284_v21 = vpop.xlane.xlu0 %283 }
 0x289   :  { %v292_v22 = vadd.f32 %v304_v20, %v284_v21 }
 0x28b   :  { %294 = vst.msk [vmem:[%s564_s7] sm:$0xff] %vm293_vm1, %v292_v22 }
 0x28c   :  { %299 = vsyncpa [#allocation4], 1 }
 0x28d   :  { %300 = vsyncpa [#allocation6], 1 }

</bundles_post_ra>
